<compile_context>
chip_gen: v6e
topology: v6e:2x2x1
jax: 0.10.0
libtpu: 0.0.40
codegen_flags: <defaults>
</compile_context>

<pallas_src>
import functools

import jax
import jax.numpy as jnp
from jax.experimental import pallas as pl
from jax.experimental.pallas import tpu as pltpu


@functools.lru_cache(maxsize=None)
def _hw_params():
    """Returns (tm_max, vmem_limit_bytes) tuned to the TPU generation."""
    vmem = None
    try:
        vmem = getattr(pltpu.get_tpu_info(), "vmem_capacity_bytes", None)
    except Exception:
        vmem = None
    if vmem is None:
        vmem = 64 * 1024 * 1024                 # conservative (v7x-sized) default
    if vmem >= 100 * 1024 * 1024:               # v5e / v6e: 128 MiB physical VMEM
        return 512, 64 * 1024 * 1024
    return 128, 32 * 1024 * 1024                # v7x: 64 MiB physical, 2 TCs


# ---------------------------------------------------------------------------
# Tiled matmul kernels (QKV projection / output projection)
# ---------------------------------------------------------------------------

def _matmul_kernel(x_ref, w_ref, o_ref):
    o_ref[...] = jnp.dot(x_ref[...], w_ref[...],
                         preferred_element_type=jnp.float32).astype(o_ref.dtype)


def _matmul_bias_kernel(x_ref, w_ref, b_ref, o_ref):
    acc = jnp.dot(x_ref[...], w_ref[...], preferred_element_type=jnp.float32)
    o_ref[...] = (acc + b_ref[...]).astype(o_ref.dtype)


def linear_pallas(x, w, b=None, *, out_dtype=jnp.float32):
    """x: (M, K) bf16, w: (K, N) bf16, b: (N,) f32 or None -> (M, N) out_dtype."""
    M, K = x.shape
    Kw, N = w.shape
    assert K == Kw

    tm_max, vmem_limit = _hw_params()
    # No jnp.pad / slice: a ragged final M tile is handled by Pallas' masked
    # writeback (each output row depends only on its own x row, so unspecified
    # pad-row reads never contaminate valid rows).
    tm = M if M <= tm_max else (tm_max // 8) * 8
    grid_m = pl.cdiv(M, tm)

    out_itemsize = jnp.dtype(out_dtype).itemsize
    cost = pl.CostEstimate(
        flops=2 * M * K * N,
        transcendentals=0,
        bytes_accessed=(M * K * x.dtype.itemsize
                        + K * N * w.dtype.itemsize
                        + M * N * out_itemsize),
    )

    # TODO(synk): for dim >= ~2048 on v7x, tile the resident (K, N) weight along
    # N (or mark it pl.Buffered(1)) so its double-buffer fits the 64 MiB VMEM.
    if b is None:
        kernel = _matmul_kernel
        in_specs = [
            pl.BlockSpec((tm, K), lambda i: (i, 0)),
            pl.BlockSpec((K, N), lambda i: (0, 0)),   # weight resident across M tiles
        ]
        args = (x, w)
    else:
        kernel = _matmul_bias_kernel
        in_specs = [
            pl.BlockSpec((tm, K), lambda i: (i, 0)),
            pl.BlockSpec((K, N), lambda i: (0, 0)),
            pl.BlockSpec((1, N), lambda i: (0, 0)),
        ]
        args = (x, w, b.reshape(1, N))

    return pl.pallas_call(
        kernel,
        out_shape=jax.ShapeDtypeStruct((M, N), out_dtype),
        grid_spec=pltpu.PrefetchScalarGridSpec(
            num_scalar_prefetch=0,
            grid=(grid_m,),
            in_specs=in_specs,
            out_specs=pl.BlockSpec((tm, N), lambda i: (i, 0)),
        ),
        compiler_params=pltpu.CompilerParams(
            dimension_semantics=("parallel",),
            vmem_limit_bytes=vmem_limit,
        ),
        cost_estimate=cost,
    )(*args)


# ---------------------------------------------------------------------------
# Attention kernel: one grid step per batch element, all heads in-kernel.
# qkv block is the contiguous 'n (3 h d)' slab; output written in 'n (h d)'.
# ---------------------------------------------------------------------------

def _attention_kernel(qkv_ref, o_ref, *, heads, head_dim, dim, scale):
    # qkv_ref: (1, N, 3*dim) bf16 = [q | k | v], each 'n (h d)'.
    # o_ref:   (1, N, dim)   bf16, 'n (h d)' (lane-dense HBM writeback).
    for h in range(heads):                                   # static unroll
        q0 = h * head_dim
        # Fold the softmax scale into q: scales (N, d) instead of (N, N).
        q = (qkv_ref[0, :, q0:q0 + head_dim].astype(jnp.float32)
             * scale).astype(jnp.bfloat16)                   # (N, d)
        k = qkv_ref[0, :, dim + q0:dim + q0 + head_dim]      # (N, d) bf16
        v = qkv_ref[0, :, 2 * dim + q0:2 * dim + q0 + head_dim]

        # scores = q @ k^T, f32 accumulation on the MXU
        s = jax.lax.dot_general(q, k, (((1,), (1,)), ((), ())),
                                preferred_element_type=jnp.float32)  # (N, N)

        # numerically-stable softmax; divide replaced by EUP approx reciprocal
        m = jnp.max(s, axis=-1, keepdims=True)
        p = jnp.exp(s - m)
        l = jnp.sum(p, axis=-1, keepdims=True)
        attn = (p * pl.reciprocal(l, approx=True)).astype(jnp.bfloat16)

        out = jnp.dot(attn, v, preferred_element_type=jnp.float32)   # (N, d)
        o_ref[0, :, q0:q0 + head_dim] = out.astype(o_ref.dtype)


def attention_pallas(qkv, *, batch, seq, heads, head_dim, scale):
    """qkv: (B, N, 3*dim) bf16 -> (B, N, dim) bf16 in 'b n (h d)' layout."""
    dim = heads * head_dim
    B, N = batch, seq
    _, vmem_limit = _hw_params()

    kernel = functools.partial(_attention_kernel, heads=heads,
                               head_dim=head_dim, dim=dim, scale=scale)
    cost = pl.CostEstimate(
        flops=4 * B * heads * N * N * head_dim,       # q@k^T and attn@v
        transcendentals=B * heads * N * N,            # exp
        bytes_accessed=(B * N * 3 * dim + B * N * dim) * qkv.dtype.itemsize,
    )

    # TODO(synk): convert to a KV-tiled online-softmax (flash) form with a
    # second "arbitrary" grid axis before N grows past ~1-2K (the (N, N) f32
    # score tile per head is the VMEM/vreg limiter).
    return pl.pallas_call(
        kernel,
        out_shape=jax.ShapeDtypeStruct((B, N, dim), jnp.bfloat16),
        grid_spec=pltpu.PrefetchScalarGridSpec(
            num_scalar_prefetch=0,
            grid=(B,),
            in_specs=[pl.BlockSpec((1, N, 3 * dim), lambda b: (b, 0, 0))],
            out_specs=pl.BlockSpec((1, N, dim), lambda b: (b, 0, 0)),
        ),
        compiler_params=pltpu.CompilerParams(
            dimension_semantics=("parallel",),
            vmem_limit_bytes=vmem_limit,
        ),
        cost_estimate=cost,
    )(qkv)


# ---------------------------------------------------------------------------
# Module
# ---------------------------------------------------------------------------

class MultiHeadAttention:
    """JAX/Pallas port of the PyTorch MultiHeadAttention module (inference)."""

    def __init__(self, dim, heads=8, dropout=0.1, *, key):
        assert dim % heads == 0
        self.dim = dim
        self.heads = heads
        self.head_dim = dim // heads
        self.scale = self.head_dim ** (-0.5)
        self.dropout = dropout  # TODO(synk): nn.Dropout is identity at inference.

        k1, k2, k3 = jax.random.split(key, 3)
        bound = 1.0 / (dim ** 0.5)  # nn.Linear default init bound
        # Weights stored transposed (in, out) for x @ W, in bf16 (MXU fast path,
        # half the weight HBM/VMEM bytes). Bias stays f32.
        self.w_qkv = jax.random.uniform(
            k1, (dim, 3 * dim), minval=-bound, maxval=bound,
            dtype=jnp.float32).astype(jnp.bfloat16)
        self.w_out = jax.random.uniform(
            k2, (dim, dim), minval=-bound, maxval=bound,
            dtype=jnp.float32).astype(jnp.bfloat16)
        self.b_out = jax.random.uniform(
            k3, (dim,), minval=-bound, maxval=bound, dtype=jnp.float32)

    def __call__(self, x):
        B, N, D = x.shape
        H, d = self.heads, self.head_dim
        assert D == self.dim

        # Pre-cast once to bf16 (halves DMA bytes into every kernel).
        xb = x.astype(jnp.bfloat16).reshape(B * N, D)

        # 1) QKV projection (no bias) -> (B*N, 3D) bf16
        qkv = linear_pallas(xb, self.w_qkv, out_dtype=jnp.bfloat16)
        qkv = qkv.reshape(B, N, 3 * D)            # free reshape, no transpose

        # 2) attention, output already in 'b n (h d)' layout -> (B, N, D) bf16
        o = attention_pallas(qkv, batch=B, seq=N, heads=H, head_dim=d,
                             scale=self.scale)

        # 3) output projection + bias -> f32
        out = linear_pallas(o.reshape(B * N, D), self.w_out, self.b_out,
                            out_dtype=jnp.float32)
        return out.reshape(B, N, D)


# ---------------------------------------------------------------------------
# Plain-JAX reference (same bf16-input / f32-accumulate math as the kernels)
# ---------------------------------------------------------------------------

def _reference_mha(module, x):
    B, N, D = x.shape
    H, d = module.heads, module.head_dim
    xb = x.astype(jnp.bfloat16).reshape(B * N, D)
    qkv = jnp.dot(xb, module.w_qkv,
                  preferred_element_type=jnp.float32).astype(jnp.bfloat16)
    qkv = qkv.reshape(B, N, 3, H, d)
    q = jnp.transpose(qkv[:, :, 0], (0, 2, 1, 3)).astype(jnp.float32) * module.scale
    q = q.astype(jnp.bfloat16)
    k = jnp.transpose(qkv[:, :, 1], (0, 2, 1, 3))
    v = jnp.transpose(qkv[:, :, 2], (0, 2, 1, 3))
    s = jnp.einsum('bhnd,bhmd->bhnm', q, k, preferred_element_type=jnp.float32)
    attn = jax.nn.softmax(s, axis=-1).astype(jnp.bfloat16)
    o = jnp.einsum('bhnm,bhmd->bhnd', attn, v,
                   preferred_element_type=jnp.float32).astype(jnp.bfloat16)
    o = jnp.transpose(o, (0, 2, 1, 3)).reshape(B * N, D)
    out = jnp.dot(o, module.w_out, preferred_element_type=jnp.float32) + module.b_out
    return out.reshape(B, N, D)


if __name__ == "__main__":
    key = jax.random.PRNGKey(0)
    k_param, k_x = jax.random.split(key)

    batch, seq_len, dim, heads = 2, 8, 32, 8

    module = MultiHeadAttention(dim, heads=heads, dropout=0.1, key=k_param)
    x = jax.random.normal(k_x, (batch, seq_len, dim), dtype=jnp.float32)

    out = jax.block_until_ready(module(x))
    ref = _reference_mha(module, x)

    assert out.shape == (batch, seq_len, dim), out.shape
    assert jnp.allclose(out, ref, atol=2e-2, rtol=2e-2), (
        float(jnp.max(jnp.abs(out - ref))))

    print("KERNEL_OK")
</pallas_src>

<mosaic_0001>
module attributes {stable_mosaic.version = 11 : i64} {
  func.func @_matmul_kernel(%arg0: i32, %arg1: memref<16x32xbf16, #tpu.memory_space<vmem>>, %arg2: memref<32x96xbf16, #tpu.memory_space<vmem>>, %arg3: memref<16x96xbf16, #tpu.memory_space<vmem>>) attributes {dimension_semantics = [#tpu.dimension_semantics<parallel>], iteration_bounds = array<i64: 1>, scalar_prefetch = 0 : i64, scratch_operands = 0 : i64, tpu.core_type = #tpu.core_type<tc>, window_params = [{transform_indices = @transform_0, window_bounds = array<i64: 16, 32>}, {pipeline_mode = #tpu.pipeline_mode<synchronous>, transform_indices = @transform_1, window_bounds = array<i64: 32, 96>}, {transform_indices = @transform_2, window_bounds = array<i64: 16, 96>}]} {
    %c0 = arith.constant 0 : index
    %c0_0 = arith.constant 0 : index
    %0 = vector.load %arg1[%c0, %c0_0] : memref<16x32xbf16, #tpu.memory_space<vmem>>, vector<16x32xbf16>
    %c0_1 = arith.constant 0 : index
    %c0_2 = arith.constant 0 : index
    %1 = vector.load %arg2[%c0_1, %c0_2] : memref<32x96xbf16, #tpu.memory_space<vmem>>, vector<32x96xbf16>
    %cst = arith.constant dense<0.000000e+00> : vector<16x96xf32>
    %2 = tpu.matmul %0, %1, %cst {dimension_numbers = #tpu.dot_dimension_numbers<[1], [0], [0], [1], [0, 0, 1, 1], [], []>} : vector<16x32xbf16>, vector<32x96xbf16>, vector<16x96xf32> -> vector<16x96xf32>
    %3 = arith.truncf %2 : vector<16x96xf32> to vector<16x96xbf16>
    %c0_3 = arith.constant 0 : index
    %c0_4 = arith.constant 0 : index
    %4 = vector.load %arg3[%c0_3, %c0_4] : memref<16x96xbf16, #tpu.memory_space<vmem>>, vector<16x96xbf16>
    tpu.vector_store %arg3[%c0_3, %c0_4], %3 {strides = array<i32>} : memref<16x96xbf16, #tpu.memory_space<vmem>>, vector<16x96xbf16>,
    return
  }
  func.func @transform_0(%arg0: i32) -> (i32, i32) {
    %c0_i32 = arith.constant 0 : i32
    %c0_i32_0 = arith.constant 0 : i32
    return %arg0, %c0_i32 : i32, i32
  }
  func.func @transform_1(%arg0: i32) -> (i32, i32) {
    %c0_i32 = arith.constant 0 : i32
    %c0_i32_0 = arith.constant 0 : i32
    %c0_i32_1 = arith.constant 0 : i32
    return %c0_i32, %c0_i32_0 : i32, i32
  }
  func.func @transform_2(%arg0: i32) -> (i32, i32) {
    %c0_i32 = arith.constant 0 : i32
    %c0_i32_0 = arith.constant 0 : i32
    return %arg0, %c0_i32 : i32, i32
  }
}

</mosaic_0001>

<bundles_post_ra>
// kernel: tpu_custom_call.1
= control target key start
LH: loop header
LB: loop body
LE: loop exit
PB: predicated region body
PF: predicated region fallthrough
CT: control target
= control target key end

     0   :  { %7 = vsyncpa [#allocation3], 0  ;;  %s273_s0 = inlined_call_operand.hbm [shape: bf16[16,32], index: 0, kind: input, shape index: {}]   ;;  %s274_s1 = inlined_call_operand.hbm [shape: bf16[32,96], index: 1, kind: input, shape index: {}]   ;;  %s275_s2 = inlined_call_operand.hbm [shape: bf16[16,96], index: 2, kind: output, shape index: {}]  }
   0x1   :  { %8 = vsyncpa [#allocation6], 0 }
   0x2   :  { %9 = vsyncpa [#allocation4], 0  ;;  %s233_s9 = smov [#allocation2]  }
   0x3   :  { %s15_s10 = sshll.u32 %s233_s9, 4  ;;  %s16_s10 = int_to_ptr.vmem [resolvable:$true] %s15_s10 }
   0x4   :  { %s175_s11 = scalar_lea.vmem %s16_s10, 128  ;;  %p180_p1 = scmp.lt.s32.totalorder %s16_s10, %s16_s10 }
   0x5   :  { %p176_p0 = scmp.ne.s32.totalorder %s16_s10, %s175_s11  ;;  %p181_p2 = scmp.lt.s32.totalorder %s175_s11, %s175_s11 }
   0x7   :  { %p182_p3 = por %p181_p2, %p180_p1 }
   0x9   :  { %p183_p4 = pnand %p182_p3, %p176_p0 }
   0xb   :  { %186 = shalt.err (!%p183_p4)
}
   0xc   :  { %s234_s12 = smov 64   ;;  %s235_s13 = smov 4  }
   0xd   :  { %21 = dma.hbm_to_vmem [thread:$0]  %s273_s0, 128, %s16_s10, [#allocation3], %s234_s12, %s234_s12, %s235_s13  }
   0xe   :  { %s236_s16 = smov [#allocation5]  }
   0xf   :  { %s27_s17 = sshll.u32 %s236_s16, 4  ;;  %s28_s17 = int_to_ptr.vmem [resolvable:$true] %s27_s17 }
  0x10   :  { %s195_s18 = scalar_lea.vmem %s28_s17, 256  ;;  %p200_p6 = scmp.lt.s32.totalorder %s28_s17, %s28_s17 }
  0x11   :  { %p196_p5 = scmp.ne.s32.totalorder %s28_s17, %s195_s18  ;;  %p201_p7 = scmp.lt.s32.totalorder %s195_s18, %s195_s18 }
  0x13   :  { %p202_p8 = por %p201_p7, %p200_p6 }
  0x15   :  { %p203_p9 = pnand %p202_p8, %p196_p5 }
  0x17   :  { %206 = shalt.err (!%p203_p9)
}
  0x18   :  { %33 = dma.hbm_to_vmem [thread:$0]  %s274_s1, 256, %s28_s17, [#allocation6], %s234_s12, %s234_s12, %s235_s13  }
  0x19   :  { %227 = dma.done.wait [#allocation3], 128  }
  0x1a   :  { %228 = vsyncadd [#allocation3], 4294967168 }
  0x1b   :  { %229 = dma.done.wait [#allocation6], 256  }
  0x1c   :  { %230 = vsyncadd [#allocation6], 4294967040  ;;  %v237_v0 = vmov 0.0   ;;  %vm238_vm0 = vmmov 0   ;;  %v164_v1 = vld [vmem:[#allocation5 + $0x8] sm:$0xff]   ;;  %v165_v2 = vld [vmem:[#allocation5] sm:$0xff]  }
  0x1d   :  { %149 = vmatprep.subr.bf16.mxu0 %v237_v0  ;;  %153 = vmatprep.mubr.msk.bf16.mxu0 %vm238_vm0, %v237_v0  ;;  %v166_v3 = vld [vmem:[#allocation2] sm:$0xff]   ;;  %vm64_vm1 = vcmask 261120   ;;  %vm117_vm2 = vcmask 781312   ;;  %s239_s0 = smov [#allocation7]  }
  0x1e   :  { %150 = vmatpush3.bf16.msra.mxu0 %v164_v1  ;;  %s125_s1 = sshll.u32 %s239_s0, 4  ;;  %s126_s1 = int_to_ptr.vmem [resolvable:$true] %s125_s1 }
  0x1f   :  { %151 = vmatprep.subr.bf16.mxu0 %v237_v0  ;;  %s207_s21 = scalar_lea.vmem %s126_s1, 128  ;;  %p212_p11 = scmp.lt.s32.totalorder %s126_s1, %s126_s1 }
  0x20   :  { %p208_p10 = scmp.ne.s32.totalorder %s126_s1, %s207_s21  ;;  %p213_p12 = scmp.lt.s32.totalorder %s207_s21, %s207_s21 }
  0x22   :  { %152 = vmatpush3.bf16.msra.mxu0 %v165_v2  ;;  %p214_p13 = por %p213_p12, %p212_p11 }
  0x24   :  { %p215_p0 = pnand %p214_p13, %p208_p10 }
  0x25   :  { %154 = vmatmul.mubr.msk.bf16.vlgmr.msra.gmra.mxu0 %vm64_vm1, %v166_v3 }
  0xe5   :  { %v102_v4 = vpop.f32.mrf.mxu0 }
  0xe6   :  { %v144_v5 = vpack.c.bf16 %v102_v4, %v102_v4 }
  0xe7   :  { %v155_v6 = vpop.f32.mrf.mxu0 }
  0xe8   :  { %118 = vst.msk [vmem:[#allocation7] sm:$0xf] %vm117_vm2, %v144_v5 }
  0xe9   :  { %v105_v7 = vpop.f32.mrf.mxu0 }
  0xea   :  { %v145_v8 = vpack.c.bf16 %v105_v7, %v105_v7 }
  0xeb   :  { %v156_v9 = vpop.f32.mrf.mxu0 }
  0xec   :  { %119 = vst.msk [vmem:[#allocation7 + $0x4] sm:$0xf] %vm117_vm2, %v145_v8 }
  0xed   :  { %218 = shalt.err (!%p215_p0)
}
  0xee   :  { %131 = dma.vmem_to_hbm [thread:$0]  %s126_s1, 128, %s275_s2, [#allocation4], %s234_s12, %s234_s12, %s235_s13  }
  0xef   :  { %231 = dma.done.wait [#allocation4], 128  }
  0xf0   :  { %232 = vsyncadd [#allocation4], 4294967168 }
  0xf1   :  { %135 = vsyncpa [#allocation3], 1 }
  0xf2   :  { %136 = vsyncpa [#allocation6], 1 }
  0xf3   :  { %137 = vsyncpa [#allocation4], 1 }

</bundles_post_ra>
